<compile_context>
chip_gen: v6e
topology: v6e:2x2x1
jax: 0.10.0
libtpu: 0.0.40
codegen_flags: <defaults>
</compile_context>

<pallas_src>
import functools

import jax
import jax.numpy as jnp
from jax import lax
from jax.experimental import pallas as pl
from jax.experimental.pallas import tpu as pltpu

_BN_EPS = 1e-5
_VMEM_LIMIT = 48 * 1024 * 1024  # fits every generation (v7x has 64 MiB/TC)


def _pick_tn(cout):
    """Cout tile: 256-wide to feed the v6e/v7x 256x256 MXU when possible."""
    if cout % 256 == 0:
        return 256
    if cout % 128 == 0:
        return 128
    return cout  # small Cout (64, 32, 1): full-dim block is still legal


# ----------------------------------------------------------------------------
# Pallas kernels
# ----------------------------------------------------------------------------
def _conv3x3_stats_kernel(x_ref, w_ref, o_ref, sum_ref, sq_ref):
    """One padded input row x one Cout tile x one vertical tap (dy).

    x_ref  : (1, 1, Wout+2, Cin)  bf16  padded input row for tap dy
    w_ref  : (3, 3*Cin, tn)       bf16  all taps of this Cout tile (dy picked in-kernel)
    o_ref  : (1, 1, Wout, tn)     f32   resident accumulator across dy
    sum_ref: (1, 1, 1, tn)        f32   per-(n,h,j) column sums   (dy == 2)
    sq_ref : (1, 1, 1, tn)        f32   per-(n,h,j) column sum-sq (dy == 2)
    """
    dy = pl.program_id(3)
    wout = o_ref.shape[2]
    cin = x_ref.shape[3]

    def tap(dx):
        lhs = x_ref[0, 0, dx:dx + wout, :]                # (Wout, Cin) bf16
        rhs = w_ref[dy, pl.ds(dx * cin, cin), :]          # (Cin,  tn ) bf16
        return jnp.dot(lhs, rhs, preferred_element_type=jnp.float32)

    acc = tap(0) + tap(1) + tap(2)                        # (Wout, tn) f32

    @pl.when(dy == 0)
    def _():
        o_ref[0, 0] = acc

    @pl.when(dy != 0)
    def _():
        o_ref[0, 0] = o_ref[0, 0] + acc

    @pl.when(dy == 2)
    def _():
        out = o_ref[0, 0]                                 # (Wout, tn) f32
        sum_ref[0, 0] = jnp.sum(out, axis=0, keepdims=True)
        sq_ref[0, 0] = jnp.sum(out * out, axis=0, keepdims=True)


def _bn_relu_kernel(x_ref, scale_ref, shift_ref, o_ref):
    """relu(x * scale + shift), f32 in, bf16 out."""
    o_ref[...] = jnp.maximum(
        x_ref[...] * scale_ref[...] + shift_ref[...], 0.0).astype(o_ref.dtype)


def _conv1x1_kernel(x_ref, w_ref, b_ref, o_ref, *, vpu_path):
    x = x_ref[0, 0]                                       # (W, Cin) bf16
    if vpu_path:
        # out_ch == 1: weighted lane reduction, skip a 1-column MXU matmul.
        o = jnp.sum(x.astype(jnp.float32) * w_ref[...].astype(jnp.float32),
                    axis=-1, keepdims=True)               # (W, 1)
    else:
        o = jnp.dot(x, w_ref[...], preferred_element_type=jnp.float32)
    o_ref[0, 0] = (o + b_ref[...]).astype(o_ref.dtype)


# ----------------------------------------------------------------------------
# Kernel wrappers
# ----------------------------------------------------------------------------
def conv3x3_bn_relu(x, w, gamma, beta, *, upsample=False, eps=_BN_EPS):
    """(optional nearest x2 upsample) -> Conv3x3(pad=1, no bias) ->
    BatchNorm2d (training-mode batch stats) -> ReLU.

    x: [N,H,W,Cin] (bf16), w: [Cout,Cin,3,3] torch layout (f32).
    Returns bf16 [N,Hout,Wout,Cout].
    """
    if x.dtype != jnp.bfloat16:
        x = x.astype(jnp.bfloat16)
    N, H, W, Cin = x.shape
    Cout = w.shape[0]

    # Tiny-Cin first layer: pad channels to 8 for sane sublane layout.
    if Cin < 8:
        pad_c = 8 - Cin
        x = jnp.pad(x, ((0, 0), (0, 0), (0, 0), (0, pad_c)))
        w = jnp.pad(w, ((0, 0), (0, pad_c), (0, 0), (0, 0)))
        Cin = 8

    if upsample:
        # Only materialize the width doubling (2x, bf16); the row doubling is
        # folded into the conv's index_map below.
        x = jnp.repeat(x, 2, axis=2)
        Hout, Wout = 2 * H, 2 * W
    else:
        Hout, Wout = H, W

    xp = jnp.pad(x, ((0, 0), (1, 1), (1, 1), (0, 0)))     # conv zero padding
    Wp2 = xp.shape[2]

    # Weight: (Cout,Cin,3,3) -> (ky, kx*Cin, Cout), bf16.
    wr = jnp.transpose(w, (2, 3, 1, 0)).reshape(3, 3 * Cin, Cout)
    wr = wr.astype(jnp.bfloat16)

    tn = _pick_tn(Cout)
    n_j = Cout // tn

    if upsample:
        x_map = lambda n, j, h, dy: (n, (h + dy + 1) // 2, 0, 0)
    else:
        x_map = lambda n, j, h, dy: (n, h + dy, 0, 0)

    conv_out, sums, sqs = pl.pallas_call(
        _conv3x3_stats_kernel,
        grid=(N, n_j, Hout, 3),
        in_specs=[
            pl.BlockSpec((1, 1, Wp2, Cin), x_map),
            pl.BlockSpec((3, 3 * Cin, tn), lambda n, j, h, dy: (0, 0, j)),
        ],
        out_specs=(
            pl.BlockSpec((1, 1, Wout, tn), lambda n, j, h, dy: (n, h, 0, j)),
            pl.BlockSpec((1, 1, 1, tn), lambda n, j, h, dy: (n, h, 0, j)),
            pl.BlockSpec((1, 1, 1, tn), lambda n, j, h, dy: (n, h, 0, j)),
        ),
        out_shape=(
            jax.ShapeDtypeStruct((N, Hout, Wout, Cout), jnp.float32),
            jax.ShapeDtypeStruct((N, Hout, 1, Cout), jnp.float32),
            jax.ShapeDtypeStruct((N, Hout, 1, Cout), jnp.float32),
        ),
        compiler_params=pltpu.CompilerParams(
            dimension_semantics=("parallel", "parallel", "arbitrary", "arbitrary"),
            vmem_limit_bytes=_VMEM_LIMIT),
    )(xp, wr)

    # BN scale/shift from the fused per-row channel sums (biased variance ==
    # nn.BatchNorm2d training-mode normalization). Tiny reduction -> plain JAX.
    cnt = float(N * Hout * Wout)
    s = jnp.sum(sums, axis=(0, 1, 2))
    q = jnp.sum(sqs, axis=(0, 1, 2))
    mean = s / cnt
    var = jnp.maximum(q / cnt - mean * mean, 0.0)
    scale = gamma * lax.rsqrt(var + eps)
    shift = beta - mean * scale

    out = pl.pallas_call(
        _bn_relu_kernel,
        grid=(N, Hout),
        in_specs=[
            pl.BlockSpec((1, 1, Wout, Cout), lambda n, h: (n, h, 0, 0)),
            pl.BlockSpec((1, 1, 1, Cout), lambda n, h: (0, 0, 0, 0)),
            pl.BlockSpec((1, 1, 1, Cout), lambda n, h: (0, 0, 0, 0)),
        ],
        out_specs=pl.BlockSpec((1, 1, Wout, Cout), lambda n, h: (n, h, 0, 0)),
        out_shape=jax.ShapeDtypeStruct((N, Hout, Wout, Cout), jnp.bfloat16),
        compiler_params=pltpu.CompilerParams(
            dimension_semantics=("parallel", "parallel"),
            vmem_limit_bytes=_VMEM_LIMIT),
    )(conv_out, scale.reshape(1, 1, 1, Cout), shift.reshape(1, 1, 1, Cout))
    return out


def conv1x1_bias(x, w, b):
    """Final 1x1 conv with bias (no BN/ReLU).  Returns f32 NHWC."""
    if x.dtype != jnp.bfloat16:
        x = x.astype(jnp.bfloat16)
    N, H, W, Cin = x.shape
    Cout = w.shape[0]
    vpu_path = (Cout == 1)
    wm = w.reshape(Cout, Cin).astype(jnp.bfloat16)
    if not vpu_path:
        wm = wm.T                                          # (Cin, Cout)
    bb = b.reshape(1, Cout).astype(jnp.float32)

    return pl.pallas_call(
        functools.partial(_conv1x1_kernel, vpu_path=vpu_path),
        grid=(N, H),
        in_specs=[
            pl.BlockSpec((1, 1, W, Cin), lambda n, h: (n, h, 0, 0)),
            pl.BlockSpec(wm.shape, lambda n, h: (0, 0)),
            pl.BlockSpec((1, Cout), lambda n, h: (0, 0)),
        ],
        out_specs=pl.BlockSpec((1, 1, W, Cout), lambda n, h: (n, h, 0, 0)),
        out_shape=jax.ShapeDtypeStruct((N, H, W, Cout), jnp.float32),
        compiler_params=pltpu.CompilerParams(
            dimension_semantics=("parallel", "parallel"),
            vmem_limit_bytes=_VMEM_LIMIT),
    )(x, wm, bb)


# ----------------------------------------------------------------------------
# Pure-layout glue (NHWC, bf16)
# ----------------------------------------------------------------------------
def maxpool2(x):
    N, H, W, C = x.shape
    return jnp.max(x.reshape(N, H // 2, 2, W // 2, 2, C), axis=(2, 4))


def crop_cat(e, d):
    dh = e.shape[1] - d.shape[1]
    dw = e.shape[2] - d.shape[2]
    if dh != 0 or dw != 0:
        d = jnp.pad(d, ((0, 0), (0, dh), (0, dw), (0, 0)))
    return jnp.concatenate([e, d], axis=-1)


def conv_block_apply(x, p):
    # Conv3x3 -> BN -> ReLU, twice.  Conv biases are created to mirror the
    # torch module but not applied: bias + training-mode BN cancels exactly.
    y = conv3x3_bn_relu(x, p['w1'], p['g1'], p['be1'])
    y = conv3x3_bn_relu(y, p['w2'], p['g2'], p['be2'])
    return y


def up_conv_apply(x, p):
    # nn.Upsample(scale=2, nearest) fused into the conv.
    return conv3x3_bn_relu(x, p['w'], p['g'], p['be'], upsample=True)


# ----------------------------------------------------------------------------
# Parameter init (deterministic, PyTorch-style uniform bounds)
# ----------------------------------------------------------------------------
def _init_conv(key, cout, cin, k):
    fan_in = cin * k * k
    bound = 1.0 / (fan_in ** 0.5)
    k1, k2 = jax.random.split(key)
    w = jax.random.uniform(k1, (cout, cin, k, k), jnp.float32, -bound, bound)
    b = jax.random.uniform(k2, (cout,), jnp.float32, -bound, bound)
    return w, b


def init_unet_params(key, in_ch=3, out_ch=1, n1=64):
    filters = [n1, n1 * 2, n1 * 4, n1 * 8, n1 * 16]
    keys = iter(jax.random.split(key, 32))

    def conv_block_params(cin, cout):
        w1, b1 = _init_conv(next(keys), cout, cin, 3)
        w2, b2 = _init_conv(next(keys), cout, cout, 3)
        return dict(w1=w1, b1=b1, g1=jnp.ones((cout,), jnp.float32),
                    be1=jnp.zeros((cout,), jnp.float32),
                    w2=w2, b2=b2, g2=jnp.ones((cout,), jnp.float32),
                    be2=jnp.zeros((cout,), jnp.float32))

    def up_conv_params(cin, cout):
        w, b = _init_conv(next(keys), cout, cin, 3)
        return dict(w=w, b=b, g=jnp.ones((cout,), jnp.float32),
                    be=jnp.zeros((cout,), jnp.float32))

    p = {}
    p['conv1'] = conv_block_params(in_ch, filters[0])
    p['conv2'] = conv_block_params(filters[0], filters[1])
    p['conv3'] = conv_block_params(filters[1], filters[2])
    p['conv4'] = conv_block_params(filters[2], filters[3])
    p['conv5'] = conv_block_params(filters[3], filters[4])
    p['up5'] = up_conv_params(filters[4], filters[3])
    p['upconv5'] = conv_block_params(filters[4], filters[3])
    p['up4'] = up_conv_params(filters[3], filters[2])
    p['upconv4'] = conv_block_params(filters[3], filters[2])
    p['up3'] = up_conv_params(filters[2], filters[1])
    p['upconv3'] = conv_block_params(filters[2], filters[1])
    p['up2'] = up_conv_params(filters[1], filters[0])
    p['upconv2'] = conv_block_params(filters[1], filters[0])
    wf, bf = _init_conv(next(keys), out_ch, filters[0], 1)
    p['convf_w'], p['convf_b'] = wf, bf
    return p


# ----------------------------------------------------------------------------
# U-Net forward (matches the PyTorch forward graph)
# ----------------------------------------------------------------------------
def unet_forward(params, x_nchw):
    x = jnp.transpose(x_nchw, (0, 2, 3, 1)).astype(jnp.bfloat16)  # NCHW -> NHWC

    e1 = conv_block_apply(x, params['conv1'])
    e2 = conv_block_apply(maxpool2(e1), params['conv2'])
    e3 = conv_block_apply(maxpool2(e2), params['conv3'])
    e4 = conv_block_apply(maxpool2(e3), params['conv4'])
    e5 = conv_block_apply(maxpool2(e4), params['conv5'])

    d5 = up_conv_apply(e5, params['up5'])
    d5 = conv_block_apply(crop_cat(e4, d5), params['upconv5'])
    d4 = up_conv_apply(d5, params['up4'])
    d4 = conv_block_apply(crop_cat(e3, d4), params['upconv4'])
    d3 = up_conv_apply(d4, params['up3'])
    d3 = conv_block_apply(crop_cat(e2, d3), params['upconv3'])
    d2 = up_conv_apply(d3, params['up2'])
    d2 = conv_block_apply(crop_cat(e1, d2), params['upconv2'])

    out = conv1x1_bias(d2, params['convf_w'], params['convf_b'])
    return jnp.transpose(out, (0, 3, 1, 2))                       # NHWC -> NCHW


# ----------------------------------------------------------------------------
# Reference (pure JAX) for a light self-check of the fused conv kernel
# ----------------------------------------------------------------------------
def _reference_conv_bn_relu(x_bf16, w, gamma, beta, *, upsample=False, eps=_BN_EPS):
    x = x_bf16.astype(jnp.float32)
    if upsample:
        x = jnp.repeat(jnp.repeat(x, 2, axis=1), 2, axis=2)
    y = lax.conv_general_dilated(
        x, jnp.transpose(w, (2, 3, 1, 0)), window_strides=(1, 1),
        padding='SAME', dimension_numbers=('NHWC', 'HWIO', 'NHWC'))
    mean = jnp.mean(y, axis=(0, 1, 2))
    var = jnp.mean(jnp.square(y - mean), axis=(0, 1, 2))
    out = (y - mean) * lax.rsqrt(var + eps) * gamma + beta
    return jnp.maximum(out, 0.0)


if __name__ == "__main__":
    key = jax.random.PRNGKey(0)
    pkey, xkey = jax.random.split(key)
    params = init_unet_params(pkey, in_ch=3, out_ch=1)
    x = jax.random.normal(xkey, (2, 3, 16, 16), jnp.float32)      # NCHW like torch

    # Light correctness self-check of the fused conv+BN+ReLU kernel (plain and
    # upsample-fused variants) against a pure-JAX reference on bf16 inputs.
    ck = jax.random.split(key, 4)
    xt = jax.random.normal(ck[0], (2, 8, 8, 16), jnp.float32).astype(jnp.bfloat16)
    wt = jax.random.normal(ck[1], (32, 16, 3, 3), jnp.float32) * 0.1
    gt = jax.random.normal(ck[2], (32,), jnp.float32) * 0.5 + 1.0
    bt = jax.random.normal(ck[3], (32,), jnp.float32) * 0.1
    for ups in (False, True):
        got = jax.jit(functools.partial(conv3x3_bn_relu, upsample=ups))(xt, wt, gt, bt)
        want = _reference_conv_bn_relu(xt, wt, gt, bt, upsample=ups)
        err = float(jnp.max(jnp.abs(got.astype(jnp.float32) - want)))
        assert err < 5e-2, (ups, err)

    fwd = jax.jit(unet_forward)
    out = fwd(params, x)
    jax.block_until_ready(out)
    assert out.shape == (2, 1, 16, 16), out.shape
    assert bool(jnp.all(jnp.isfinite(out)))
    print("KERNEL_OK")
</pallas_src>

<mosaic_0001>
module attributes {stable_mosaic.version = 11 : i64} {
  func.func @_conv3x3_stats_kernel(%arg0: i32, %arg1: i32, %arg2: i32, %arg3: i32, %arg4: memref<1x1x10x16xbf16, #tpu.memory_space<vmem>>, %arg5: memref<3x48x32xbf16, #tpu.memory_space<vmem>>, %arg6: memref<1x1x8x32xf32, #tpu.memory_space<vmem>>, %arg7: memref<1x1x1x32xf32, #tpu.memory_space<vmem>>, %arg8: memref<1x1x1x32xf32, #tpu.memory_space<vmem>>) attributes {dimension_semantics = [#tpu.dimension_semantics<parallel>, #tpu.dimension_semantics<parallel>, #tpu.dimension_semantics<arbitrary>, #tpu.dimension_semantics<arbitrary>], iteration_bounds = array<i64: 2, 1, 8, 3>, scalar_prefetch = 0 : i64, scratch_operands = 0 : i64, tpu.core_type = #tpu.core_type<tc>, window_params = [{transform_indices = @transform_0, window_bounds = array<i64: 1, 1, 10, 16>}, {transform_indices = @transform_1, window_bounds = array<i64: 3, 48, 32>}, {transform_indices = @transform_2, window_bounds = array<i64: 1, 1, 8, 32>}, {transform_indices = @transform_3, window_bounds = array<i64: 1, 1, 1, 32>}, {transform_indices = @transform_4, window_bounds = array<i64: 1, 1, 1, 32>}]} {
    %c0 = arith.constant 0 : index
    %c0_0 = arith.constant 0 : index
    %c0_1 = arith.constant 0 : index
    %c0_2 = arith.constant 0 : index
    %0 = vector.load %arg4[%c0, %c0_0, %c0_1, %c0_2] : memref<1x1x10x16xbf16, #tpu.memory_space<vmem>>, vector<1x1x8x16xbf16>
    %1 = vector.shape_cast %0 : vector<1x1x8x16xbf16> to vector<8x16xbf16>
    %2 = arith.index_cast %arg3 : i32 to index
    %c0_3 = arith.constant 0 : index
    %c0_4 = arith.constant 0 : index
    %3 = vector.load %arg5[%2, %c0_3, %c0_4] : memref<3x48x32xbf16, #tpu.memory_space<vmem>>, vector<1x16x32xbf16>
    %4 = vector.shape_cast %3 : vector<1x16x32xbf16> to vector<16x32xbf16>
    %cst = arith.constant dense<0.000000e+00> : vector<8x32xf32>
    %5 = tpu.matmul %1, %4, %cst {dimension_numbers = #tpu.dot_dimension_numbers<[1], [0], [0], [1], [0, 0, 1, 1], [], []>} : vector<8x16xbf16>, vector<16x32xbf16>, vector<8x32xf32> -> vector<8x32xf32>
    %c0_5 = arith.constant 0 : index
    %c0_6 = arith.constant 0 : index
    %c1 = arith.constant 1 : index
    %c0_7 = arith.constant 0 : index
    %6 = vector.load %arg4[%c0_5, %c0_6, %c1, %c0_7] : memref<1x1x10x16xbf16, #tpu.memory_space<vmem>>, vector<1x1x8x16xbf16>
    %7 = vector.shape_cast %6 : vector<1x1x8x16xbf16> to vector<8x16xbf16>
    %8 = arith.index_cast %arg3 : i32 to index
    %c16 = arith.constant 16 : index
    %c0_8 = arith.constant 0 : index
    %9 = vector.load %arg5[%8, %c16, %c0_8] : memref<3x48x32xbf16, #tpu.memory_space<vmem>>, vector<1x16x32xbf16>
    %10 = vector.shape_cast %9 : vector<1x16x32xbf16> to vector<16x32xbf16>
    %cst_9 = arith.constant dense<0.000000e+00> : vector<8x32xf32>
    %11 = tpu.matmul %7, %10, %cst_9 {dimension_numbers = #tpu.dot_dimension_numbers<[1], [0], [0], [1], [0, 0, 1, 1], [], []>} : vector<8x16xbf16>, vector<16x32xbf16>, vector<8x32xf32> -> vector<8x32xf32>
    %12 = arith.addf %5, %11 : vector<8x32xf32>
    %c0_10 = arith.constant 0 : index
    %c0_11 = arith.constant 0 : index
    %c2 = arith.constant 2 : index
    %c0_12 = arith.constant 0 : index
    %13 = vector.load %arg4[%c0_10, %c0_11, %c2, %c0_12] : memref<1x1x10x16xbf16, #tpu.memory_space<vmem>>, vector<1x1x8x16xbf16>
    %14 = vector.shape_cast %13 : vector<1x1x8x16xbf16> to vector<8x16xbf16>
    %15 = arith.index_cast %arg3 : i32 to index
    %c32 = arith.constant 32 : index
    %c0_13 = arith.constant 0 : index
    %16 = vector.load %arg5[%15, %c32, %c0_13] : memref<3x48x32xbf16, #tpu.memory_space<vmem>>, vector<1x16x32xbf16>
    %17 = vector.shape_cast %16 : vector<1x16x32xbf16> to vector<16x32xbf16>
    %cst_14 = arith.constant dense<0.000000e+00> : vector<8x32xf32>
    %18 = tpu.matmul %14, %17, %cst_14 {dimension_numbers = #tpu.dot_dimension_numbers<[1], [0], [0], [1], [0, 0, 1, 1], [], []>} : vector<8x16xbf16>, vector<16x32xbf16>, vector<8x32xf32> -> vector<8x32xf32>
    %19 = arith.addf %12, %18 : vector<8x32xf32>
    %c0_i32 = arith.constant 0 : i32
    %20 = arith.cmpi eq, %arg3, %c0_i32 : i32
    %21 = arith.extui %20 : i1 to i32
    %c0_i32_15 = arith.constant 0 : i32
    %22 = arith.cmpi ne, %21, %c0_i32_15 : i32
    scf.if %22 {
      %c0_19 = arith.constant 0 : index
      %c0_20 = arith.constant 0 : index
      %c0_21 = arith.constant 0 : index
      %c0_22 = arith.constant 0 : index
      %29 = vector.load %arg6[%c0_19, %c0_20, %c0_21, %c0_22] : memref<1x1x8x32xf32, #tpu.memory_space<vmem>>, vector<1x1x8x32xf32>
      %30 = vector.shape_cast %29 : vector<1x1x8x32xf32> to vector<8x32xf32>
      %31 = vector.shape_cast %19 : vector<8x32xf32> to vector<1x1x8x32xf32>
      tpu.vector_store %arg6[%c0_19, %c0_20, %c0_21, %c0_22], %31 {strides = array<i32>} : memref<1x1x8x32xf32, #tpu.memory_space<vmem>>, vector<1x1x8x32xf32>,
    } else {
    }
    %c0_i32_16 = arith.constant 0 : i32
    %23 = arith.cmpi ne, %arg3, %c0_i32_16 : i32
    %24 = arith.extui %23 : i1 to i32
    %c0_i32_17 = arith.constant 0 : i32
    %25 = arith.cmpi ne, %24, %c0_i32_17 : i32
    scf.if %25 {
      %c0_19 = arith.constant 0 : index
      %c0_20 = arith.constant 0 : index
      %c0_21 = arith.constant 0 : index
      %c0_22 = arith.constant 0 : index
      %29 = vector.load %arg6[%c0_19, %c0_20, %c0_21, %c0_22] : memref<1x1x8x32xf32, #tpu.memory_space<vmem>>, vector<1x1x8x32xf32>
      %30 = vector.shape_cast %29 : vector<1x1x8x32xf32> to vector<8x32xf32>
      %31 = arith.addf %30, %19 : vector<8x32xf32>
      %c0_23 = arith.constant 0 : index
      %c0_24 = arith.constant 0 : index
      %c0_25 = arith.constant 0 : index
      %c0_26 = arith.constant 0 : index
      %32 = vector.load %arg6[%c0_23, %c0_24, %c0_25, %c0_26] : memref<1x1x8x32xf32, #tpu.memory_space<vmem>>, vector<1x1x8x32xf32>
      %33 = vector.shape_cast %32 : vector<1x1x8x32xf32> to vector<8x32xf32>
      %34 = vector.shape_cast %31 : vector<8x32xf32> to vector<1x1x8x32xf32>
      tpu.vector_store %arg6[%c0_23, %c0_24, %c0_25, %c0_26], %34 {strides = array<i32>} : memref<1x1x8x32xf32, #tpu.memory_space<vmem>>, vector<1x1x8x32xf32>,
    } else {
    }
    %c2_i32 = arith.constant 2 : i32
    %26 = arith.cmpi eq, %arg3, %c2_i32 : i32
    %27 = arith.extui %26 : i1 to i32
    %c0_i32_18 = arith.constant 0 : i32
    %28 = arith.cmpi ne, %27, %c0_i32_18 : i32
    scf.if %28 {
      %c0_19 = arith.constant 0 : index
      %c0_20 = arith.constant 0 : index
      %c0_21 = arith.constant 0 : index
      %c0_22 = arith.constant 0 : index
      %29 = vector.load %arg6[%c0_19, %c0_20, %c0_21, %c0_22] : memref<1x1x8x32xf32, #tpu.memory_space<vmem>>, vector<1x1x8x32xf32>
      %30 = vector.shape_cast %29 : vector<1x1x8x32xf32> to vector<8x32xf32>
      %cst_23 = arith.constant dense<0.000000e+00> : vector<32xf32>
      %31 = vector.multi_reduction <add>, %30, %cst_23 [0] : vector<8x32xf32> to vector<32xf32>
      %32 = vector.shape_cast %31 : vector<32xf32> to vector<1x32xf32>
      %c0_24 = arith.constant 0 : index
      %c0_25 = arith.constant 0 : index
      %c0_26 = arith.constant 0 : index
      %c0_27 = arith.constant 0 : index
      %33 = vector.load %arg7[%c0_24, %c0_25, %c0_26, %c0_27] : memref<1x1x1x32xf32, #tpu.memory_space<vmem>>, vector<1x1x1x32xf32>
      %34 = vector.shape_cast %33 : vector<1x1x1x32xf32> to vector<1x32xf32>
      %35 = vector.shape_cast %32 : vector<1x32xf32> to vector<1x1x1x32xf32>
      tpu.vector_store %arg7[%c0_24, %c0_25, %c0_26, %c0_27], %35 {strides = array<i32>} : memref<1x1x1x32xf32, #tpu.memory_space<vmem>>, vector<1x1x1x32xf32>,
      %36 = arith.mulf %30, %30 : vector<8x32xf32>
      %cst_28 = arith.constant dense<0.000000e+00> : vector<32xf32>
      %37 = vector.multi_reduction <add>, %36, %cst_28 [0] : vector<8x32xf32> to vector<32xf32>
      %38 = vector.shape_cast %37 : vector<32xf32> to vector<1x32xf32>
      %c0_29 = arith.constant 0 : index
      %c0_30 = arith.constant 0 : index
      %c0_31 = arith.constant 0 : index
      %c0_32 = arith.constant 0 : index
      %39 = vector.load %arg8[%c0_29, %c0_30, %c0_31, %c0_32] : memref<1x1x1x32xf32, #tpu.memory_space<vmem>>, vector<1x1x1x32xf32>
      %40 = vector.shape_cast %39 : vector<1x1x1x32xf32> to vector<1x32xf32>
      %41 = vector.shape_cast %38 : vector<1x32xf32> to vector<1x1x1x32xf32>
      tpu.vector_store %arg8[%c0_29, %c0_30, %c0_31, %c0_32], %41 {strides = array<i32>} : memref<1x1x1x32xf32, #tpu.memory_space<vmem>>, vector<1x1x1x32xf32>,
    } else {
    }
    return
  }
  func.func @transform_0(%arg0: i32, %arg1: i32, %arg2: i32, %arg3: i32) -> (i32, i32, i32, i32) {
    %0 = arith.addi %arg2, %arg3 : i32
    %c0_i32 = arith.constant 0 : i32
    %c0_i32_0 = arith.constant 0 : i32
    %c0_i32_1 = arith.constant 0 : i32
    return %arg0, %0, %c0_i32, %c0_i32_0 : i32, i32, i32, i32
  }
  func.func @transform_1(%arg0: i32, %arg1: i32, %arg2: i32, %arg3: i32) -> (i32, i32, i32) {
    %c0_i32 = arith.constant 0 : i32
    %c0_i32_0 = arith.constant 0 : i32
    %c0_i32_1 = arith.constant 0 : i32
    return %c0_i32, %c0_i32_0, %arg1 : i32, i32, i32
  }
  func.func @transform_2(%arg0: i32, %arg1: i32, %arg2: i32, %arg3: i32) -> (i32, i32, i32, i32) {
    %c0_i32 = arith.constant 0 : i32
    %c0_i32_0 = arith.constant 0 : i32
    return %arg0, %arg2, %c0_i32, %arg1 : i32, i32, i32, i32
  }
  func.func @transform_3(%arg0: i32, %arg1: i32, %arg2: i32, %arg3: i32) -> (i32, i32, i32, i32) {
    %c0_i32 = arith.constant 0 : i32
    %c0_i32_0 = arith.constant 0 : i32
    return %arg0, %arg2, %c0_i32, %arg1 : i32, i32, i32, i32
  }
  func.func @transform_4(%arg0: i32, %arg1: i32, %arg2: i32, %arg3: i32) -> (i32, i32, i32, i32) {
    %c0_i32 = arith.constant 0 : i32
    %c0_i32_0 = arith.constant 0 : i32
    return %arg0, %arg2, %c0_i32, %arg1 : i32, i32, i32, i32
  }
}

module attributes {stable_mosaic.version = 11 : i64} {
  func.func @_bn_relu_kernel(%arg0: i32, %arg1: i32, %arg2: memref<1x1x8x32xf32, #tpu.memory_space<vmem>>, %arg3: memref<1x1x1x32xf32, #tpu.memory_space<vmem>>, %arg4: memref<1x1x1x32xf32, #tpu.memory_space<vmem>>, %arg5: memref<1x1x8x32xbf16, #tpu.memory_space<vmem>>) attributes {dimension_semantics = [#tpu.dimension_semantics<parallel>, #tpu.dimension_semantics<parallel>], iteration_bounds = array<i64: 2, 8>, scalar_prefetch = 0 : i64, scratch_operands = 0 : i64, tpu.core_type = #tpu.core_type<tc>, window_params = [{transform_indices = @transform_0, window_bounds = array<i64: 1, 1, 8, 32>}, {pipeline_mode = #tpu.pipeline_mode<synchronous>, transform_indices = @transform_1, window_bounds = array<i64: 1, 1, 1, 32>}, {pipeline_mode = #tpu.pipeline_mode<synchronous>, transform_indices = @transform_2, window_bounds = array<i64: 1, 1, 1, 32>}, {transform_indices = @transform_3, window_bounds = array<i64: 1, 1, 8, 32>}]} {
    %c0 = arith.constant 0 : index
    %c0_0 = arith.constant 0 : index
    %c0_1 = arith.constant 0 : index
    %c0_2 = arith.constant 0 : index
    %0 = vector.load %arg2[%c0, %c0_0, %c0_1, %c0_2] : memref<1x1x8x32xf32, #tpu.memory_space<vmem>>, vector<1x1x8x32xf32>
    %c0_3 = arith.constant 0 : index
    %c0_4 = arith.constant 0 : index
    %c0_5 = arith.constant 0 : index
    %c0_6 = arith.constant 0 : index
    %1 = vector.load %arg3[%c0_3, %c0_4, %c0_5, %c0_6] : memref<1x1x1x32xf32, #tpu.memory_space<vmem>>, vector<1x1x1x32xf32>
    %2 = vector.broadcast %1 : vector<1x1x1x32xf32> to vector<1x1x8x32xf32>
    %3 = arith.mulf %0, %2 : vector<1x1x8x32xf32>
    %c0_7 = arith.constant 0 : index
    %c0_8 = arith.constant 0 : index
    %c0_9 = arith.constant 0 : index
    %c0_10 = arith.constant 0 : index
    %4 = vector.load %arg4[%c0_7, %c0_8, %c0_9, %c0_10] : memref<1x1x1x32xf32, #tpu.memory_space<vmem>>, vector<1x1x1x32xf32>
    %5 = vector.broadcast %4 : vector<1x1x1x32xf32> to vector<1x1x8x32xf32>
    %6 = arith.addf %3, %5 : vector<1x1x8x32xf32>
    %cst = arith.constant 0.000000e+00 : f32
    %7 = vector.broadcast %cst : f32 to vector<1x1x8x32xf32>
    %8 = arith.maximumf %6, %7 : vector<1x1x8x32xf32>
    %9 = arith.truncf %8 : vector<1x1x8x32xf32> to vector<1x1x8x32xbf16>
    %c0_11 = arith.constant 0 : index
    %c0_12 = arith.constant 0 : index
    %c0_13 = arith.constant 0 : index
    %c0_14 = arith.constant 0 : index
    %10 = vector.load %arg5[%c0_11, %c0_12, %c0_13, %c0_14] : memref<1x1x8x32xbf16, #tpu.memory_space<vmem>>, vector<1x1x8x32xbf16>
    tpu.vector_store %arg5[%c0_11, %c0_12, %c0_13, %c0_14], %9 {strides = array<i32>} : memref<1x1x8x32xbf16, #tpu.memory_space<vmem>>, vector<1x1x8x32xbf16>,
    return
  }
  func.func @transform_0(%arg0: i32, %arg1: i32) -> (i32, i32, i32, i32) {
    %c0_i32 = arith.constant 0 : i32
    %c0_i32_0 = arith.constant 0 : i32
    %c0_i32_1 = arith.constant 0 : i32
    return %arg0, %arg1, %c0_i32, %c0_i32_0 : i32, i32, i32, i32
  }
  func.func @transform_1(%arg0: i32, %arg1: i32) -> (i32, i32, i32, i32) {
    %c0_i32 = arith.constant 0 : i32
    %c0_i32_0 = arith.constant 0 : i32
    %c0_i32_1 = arith.constant 0 : i32
    %c0_i32_2 = arith.constant 0 : i32
    %c0_i32_3 = arith.constant 0 : i32
    return %c0_i32, %c0_i32_0, %c0_i32_1, %c0_i32_2 : i32, i32, i32, i32
  }
  func.func @transform_2(%arg0: i32, %arg1: i32) -> (i32, i32, i32, i32) {
    %c0_i32 = arith.constant 0 : i32
    %c0_i32_0 = arith.constant 0 : i32
    %c0_i32_1 = arith.constant 0 : i32
    %c0_i32_2 = arith.constant 0 : i32
    %c0_i32_3 = arith.constant 0 : i32
    return %c0_i32, %c0_i32_0, %c0_i32_1, %c0_i32_2 : i32, i32, i32, i32
  }
  func.func @transform_3(%arg0: i32, %arg1: i32) -> (i32, i32, i32, i32) {
    %c0_i32 = arith.constant 0 : i32
    %c0_i32_0 = arith.constant 0 : i32
    %c0_i32_1 = arith.constant 0 : i32
    return %arg0, %arg1, %c0_i32, %c0_i32_0 : i32, i32, i32, i32
  }
}

</mosaic_0001>

<bundles_post_ra>
// kernel: conv3x3_bn_relu.2
= control target key start
LH: loop header
LB: loop body
LE: loop exit
PB: predicated region body
PF: predicated region fallthrough
CT: control target
= control target key end

     0   :  { %s973_s15 = smov 0   ;;  %s975_s16 = smov 0   ;;  %s1099_s0 = inlined_call_operand.vmem [shape: bf16[2,10,10,16], index: 0, kind: input, shape index: {}]   ;;  %s1100_s1 = inlined_call_operand.vmem [shape: bf16[3,48,32], index: 1, kind: input, shape index: {}]   ;;  %s1101_s2 = inlined_call_operand.vmem [shape: f32[2,8,8,32], index: 2, kind: output, shape index: {0}]   ;;  %s1102_s3 = inlined_call_operand.vmem [shape: f32[2,8,1,32], index: 3, kind: output, shape index: {1}]   ;;  %s1103_s4 = inlined_call_operand.vmem [shape: f32[2,8,1,32], index: 4, kind: output, shape index: {2}]  }
   0x1   :  { %s977_s17 = smov 0   ;;  %s979_s18 = smov 0  }
   0x2   :  { %s981_s19 = smov 0   ;;  %s983_s20 = smov 0  }
   0x3   :  { %s985_s21 = smov 0  }
   0x4 LB: > { %s30_s22 = sadd.s32 1, %s932_s18  ;;  %s33_s23 = sadd.s32 1, %s936_s19  ;;  %s944_s21 = sphi %s985_s21, %s15_s21   ;;  %s940_s20 = sphi %s983_s20, %s1109_s20   ;;  %s936_s19 = sphi %s981_s19, %s1108_s19   ;;  %s932_s18 = sphi %s979_s18, %s1107_s18   ;;  %s928_s17 = sphi %s977_s17, %s1106_s17   ;;  %s924_s16 = sphi %s975_s16, %s1105_s16   ;;  %s920_s15 = sphi %s973_s15, %s1104_s15  }
   0x5   : > { %p31_p0 = scmp.ge.s32.totalorder %s30_s22, 3  ;;  %p780_p1 = scmp.ge.s32.totalorder %s944_s21, 1 }
   0x6   : > { %p224_p2 = scmp.lt.s32.totalorder %s944_s21, 49  ;;  %s41_s24 = sadd.s32 1, %s940_s20 }
   0x7   : > { %s1111_s22 = smov (%p31_p0, %s30_s22), 0  ;;  %s1113_s23 = smov (!%p31_p0, %s33_s23), %s936_s19 }
   0x8   : > { %p225_p3 = pnand %p780_p1, %p224_p2  ;;  %p35_p4 = scmp.ge.s32.totalorder %s1113_s23, 8 }
   0x9   : > { %s801_s25 = smul.u32 (!%p225_p3), 24, %s920_s15  ;;  %s285_s26 = sadd.s32 (!%p225_p3), %s920_s15, %s924_s16 }
   0xa   : > { %s1115_s23 = smov (%p35_p4, %s1113_s23), 0  ;;  %s1117_s24 = smov (!%p35_p4, %s41_s24), %s940_s20 }
   0xb   : > { %p43_p5 = scmp.ge.s32.totalorder %s1117_s24, 2  ;;  %228 = sbr.rel (%p225_p3) target bundleno = 275 (0x113), region = 28 }
   0xc   : > { %p286_p6 = scmp.lt.s32.totalorder (!%p225_p3), %s928_s17, 1  ;;  %p288_p7 = scmp.lt.s32.totalorder (!%p225_p3), %s285_s26, 9 }
   0xd   : > { %s1119_s24 = smov (%p43_p5, %s1117_s24), 0  ;;  %s1028_s29 = scalar_lea.vmem (!%p225_p3), %s1100_s1, %s801_s25 }
   0xe   : > { %p302_p8 = scmp.lt.s32.totalorder (!%p225_p3), %s924_s16, 7  ;;  %p796_p9 = scmp.ne.s32.totalorder (!%p225_p3), %s920_s15, 0 }
  0x10   : > { %v946_v0 = vmov 0.0   ;;  %vm947_vm0 = vmmov 0   ;;  %v885_v1 = vld [vmem:[%s1028_s29 + $0x8] sm:$0xff]   ;;  %s1121_s17 = smov (!%p286_p6, %s928_s17), 1  ;;  %v886_v2 = vld [vmem:[%s1028_s29] sm:$0xff]   ;;  %s1123_s26 = smov (!%p288_p7, %s285_s26), 9 }
  0x11   : > { %808 = vmatprep.subr.bf16.mxu0 %v946_v0  ;;  %814 = vmatprep.subr.bf16.mxu1 %v946_v0  ;;  %s826_s30 = smul.u32 20, %s1121_s17  ;;  %s781_s5 = sshll.u32 %s1123_s26, 1  ;;  %vm359_vm1 = vcmask 130048   ;;  %v888_v9 = vld [vmem:[%s1028_s29 + $0x10] sm:$0xff]  }
  0x12   : > { %810 = vmatprep.mubr.msk.bf16.mxu0 %vm947_vm0, %v946_v0  ;;  %816 = vmatprep.mubr.msk.bf16.mxu1 %vm947_vm0, %v946_v0  ;;  %s783_s11 = sshll.u32 %s1121_s17, 3  ;;  %s1125_s16 = smov (!%p302_p8, %s924_s16), 7 }
  0x13   : > { %809 = vmatpush3.bf16.msra.mxu0 %v885_v1  ;;  %815 = vmatpush3.bf16.msra.mxu1 %v886_v2  ;;  %s292_s6 = sadd.s32 %s826_s30, %s781_s5  ;;  %s1041_s12 = sadd.s32 %s783_s11, %s1125_s16 }
  0x14   : > { %820 = vmatprep.subr.bf16.mxu0 %v946_v0  ;;  %s782_s7 = sshll.u32 %s292_s6, 2  ;;  %s784_s13 = sshll.u32 %s1041_s12, 3 }
  0x15   : > { %s294_s10 = scalar_lea.vmem %s1099_s0, %s782_s7  ;;  %s320_s26 = scalar_lea.vmem %s1102_s3, %s1041_s12 }
  0x16   : > { %v332_v3 = vld [vmem:[%s294_s10] sm:$0xf]  ;;  %v338_v4 = vld [vmem:[%s294_s10 + $0x4] sm:$0x1]  ;;  %s1051_s28 = scalar_lea.vmem %s1101_s2, %s784_s13  ;;  %s330_s16 = scalar_lea.vmem %s1103_s4, %s1041_s12 }
  0x17   : > { %v788_v5 = vcombine.low %v332_v3, %v338_v4  ;;  %817 = vmatmul.mubr.msk.bf16.vlgmr.msra.gmra.mxu1 %vm359_vm1, %v332_v3  ;;  %v452_v10 = vld [vmem:[%s294_s10] sm:$0xe] }
  0x18   : > { %v793_v12 = vcombine.low %v452_v10, %v338_v4 }
  0x19   : > { %v347_v6 = vshrl.u32 %v788_v5, 16  ;;  %v349_v7 = vshll.u32 %v788_v5, 16 }
  0x1a   : > { %v458_v13 = vrot.slane %v793_v12, 1 }
  0x1b   : > { %v351_v8 = vrot.slane %v349_v7, 1 }
  0x1d   : > { %v352_v11 = vor.u32 %v351_v8, %v347_v6 }
  0x1f   : > { %811 = vmatmul.mubr.msk.bf16.vlgmr.msra.gmra.mxu0 %vm359_vm1, %v352_v11 }
  0x20   : > { %821 = vmatpush3.bf16.msra.mxu0 %v888_v9  ;;  %822 = vmatprep.mubr.msk.bf16.mxu0 %vm947_vm0, %v946_v0 }
  0x27   : > { %823 = vmatmul.mubr.msk.bf16.vlgmr.msra.gmra.mxu0 %vm359_vm1, %v458_v13 }
  0xd7   : > { %v446_v14 = vpop.f32.mrf.mxu1 }
  0xd9   : > { %v818_v15 = vpop.f32.mrf.mxu1 }
  0xdb   : > { %v449_v16 = vpop.f32.mrf.mxu1 }
  0xdd   : > { %v819_v17 = vpop.f32.mrf.mxu1 }
  0xdf   : > { %v397_v18 = vpop.f32.mrf.mxu0 }
  0xe0   : > { %v447_v22 = vadd.f32 %v446_v14, %v397_v18 }
  0xe1   : > { %v812_v19 = vpop.f32.mrf.mxu0 }
  0xe3   : > { %v400_v20 = vpop.f32.mrf.mxu0 }
  0xe5   : > { %v813_v21 = vpop.f32.mrf.mxu0 }
  0xe7   : > { %v502_v23 = vpop.f32.mrf.mxu0 }
  0xe8   : > { %v508_v24 = vadd.f32 %v502_v23, %v447_v22 }
  0xe9   : > { %v824_v25 = vpop.f32.mrf.mxu0  ;;  %512 = sbr.rel (%p796_p9) target bundleno = 240 (0xf0), region = 32 }
  0xeb   : > { %v505_v26 = vpop.f32.mrf.mxu0 }
  0xed   : > { %v825_v27 = vpop.f32.mrf.mxu0 }
  0xee   : > { %vm513_vm2 = vcmask 261120  }
  0xef   : > { %514 = vst.msk [vmem:[%s1051_s28] sm:$0xff] %vm513_vm2, %v508_v24 }
  0xf0 PF: > { %p797_p10 = scmp.eq.s32.totalorder %s920_s15, 0 }
  0xf2   : > { %518 = sbr.rel (%p797_p10) target bundleno = 251 (0xfb), region = 36 }
  0xf7   : > { %v519_v28 = vld [vmem:[%s1051_s28] sm:$0xff]  ;;  %vm521_vm3 = vcmask 261120  }
  0xf8   : > { %v520_v29 = vadd.f32 %v519_v28, %v508_v24 }
  0xfa   : > { %522 = vst.msk [vmem:[%s1051_s28] sm:$0xff] %vm521_vm3, %v520_v29 }
  0xfb PF: > { %p798_p11 = scmp.ne.s32.totalorder %s920_s15, 2 }
  0xfd   : > { %526 = sbr.rel (%p798_p11) target bundleno = 275 (0x113), region = 40 }
 0x102   : > { %v527_v30 = vld [vmem:[%s1051_s28] sm:$0xff]  ;;  %vm528_vm4 = vcmask 261120   ;;  %vm536_vm5 = vcmask 253952  }
 0x103   : > { %v529_v31 = vsel %vm528_vm4, %v527_v30, 0.0  ;;  %v538_v32 = vmul.f32 %v527_v30, %v527_v30 }
 0x104   : > { %v530_v33 = vrot.slane %v529_v31, 4 }
 0x105   : > { %v539_v34 = vsel %vm528_vm4, %v538_v32, 0.0 }
 0x106   : > { %v531_v35 = vadd.f32 %v530_v33, %v529_v31  ;;  %v540_v36 = vrot.slane %v539_v34, 4 }
 0x108   : > { %v532_v37 = vrot.slane %v531_v35, 2  ;;  %v541_v38 = vadd.f32 %v540_v36, %v539_v34 }
 0x10a   : > { %v533_v39 = vadd.f32 %v532_v37, %v531_v35  ;;  %v542_v40 = vrot.slane %v541_v38, 2 }
 0x10c   : > { %v534_v41 = vrot.slane %v533_v39, 1  ;;  %v543_v42 = vadd.f32 %v542_v40, %v541_v38 }
 0x10e   : > { %v535_v43 = vadd.f32 %v534_v41, %v533_v39  ;;  %v544_v44 = vrot.slane %v543_v42, 1 }
 0x110   : > { %537 = vst.msk [vmem:[%s320_s26] sm:$0x1] %vm536_vm5, %v535_v43  ;;  %v545_v45 = vadd.f32 %v544_v44, %v543_v42 }
 0x112   : > { %546 = vst.msk [vmem:[%s330_s16] sm:$0x1] %vm536_vm5, %v545_v45 }
 0x113 PF: > { %s15_s21 = sadd.s32 1, %s944_s21   ;;  %s1104_s15 = smov %s932_s18 }
 0x114   : > { %p12_p12 = scmp.ge.s32.totalorder %s15_s21, 50   ;;  %s1105_s16 = smov %s936_s19 }
 0x115   : > { %s1106_s17 = smov %s940_s20  ;;  %s1107_s18 = smov %s1111_s22 }
 0x116   : > { %s1108_s19 = smov %s1115_s23  ;;  %s1109_s20 = smov %s1119_s24 }
 0x117   :  { %14 = sbr.rel (!%p12_p12) target bundleno = 4 (0x4), region = 98 }

// kernel: conv3x3_bn_relu.3
= control target key start
LH: loop header
LB: loop body
LE: loop exit
PB: predicated region body
PF: predicated region fallthrough
CT: control target
= control target key end

     0   :  { %8 = vsyncpa [#allocation3], 0  ;;  %s640_s0 = inlined_call_operand.vmem [shape: f32[2,8,8,32], index: 0, kind: input, shape index: {}]   ;;  %s641_s1 = inlined_call_operand.vmem [shape: f32[1,1,1,32], index: 1, kind: input, shape index: {}]   ;;  %s642_s2 = inlined_call_operand.vmem [shape: f32[1,1,1,32], index: 2, kind: input, shape index: {}]   ;;  %s643_s3 = inlined_call_operand.hbm [shape: bf16[2,8,8,32], index: 3, kind: output, shape index: {}]  }
   0x1   :  { %10 = vsyncpa [#allocation3 + $0x1], 0  ;;  %s510_s12 = smov 0   ;;  %s512_s13 = smov 0  }
   0x2   :  { %s514_s14 = smov 0   ;;  %s516_s15 = smov 0  }
   0x3   :  { %s518_s16 = smov 0   ;;  %s520_s17 = smov 0  }
   0x4   :  { %s522_s18 = smov 0   ;;  %s524_s19 = smov 0  }
   0x5 LB: > { %s309_s20 = sadd.s32 4294967295, %s487_s19   ;;  %s310_s21 = sadd.s32 4294967294, %s487_s19   ;;  %s487_s19 = sphi %s524_s19, %s16_s19   ;;  %s483_s18 = sphi %s522_s18, %s655_s18   ;;  %s479_s17 = sphi %s520_s17, %s654_s17   ;;  %s475_s16 = sphi %s518_s16, %s653_s16   ;;  %s471_s15 = sphi %s516_s15, %s652_s15   ;;  %s467_s14 = sphi %s514_s14, %s651_s14   ;;  %s463_s13 = sphi %s512_s13, %s650_s13   ;;  %s459_s12 = sphi %s510_s12, %s649_s12  }
   0x6   : > { %s25_s22 = sadd.s32 1, %s479_s17  ;;  %s28_s23 = sadd.s32 1, %s483_s18 }
   0x7   : > { %p26_p0 = scmp.ge.s32.totalorder %s25_s22, 8  ;;  %p117_p1 = scmp.ne.s32.totalorder %s467_s14, %s463_s13 }
   0x8   : > { %p118_p2 = scmp.eq.s32.totalorder %s309_s20, 15  ;;  %p123_p5 = scmp.ne.s32.totalorder %s463_s13, %s459_s12 }
   0x9   : > { %s657_s22 = smov (%p26_p0, %s25_s22), 0  ;;  %s659_s23 = smov (!%p26_p0, %s28_s23), %s483_s18 }
   0xa   : > { %s103_s24 = ssub.s32 %s479_s17, %s657_s22  ;;  %p561_p3 = por %p118_p2, %p117_p1 }
   0xb   : > { %p30_p4 = scmp.ge.s32.totalorder %s659_s23, 2  ;;  %p124_p6 = scmp.eq.s32.totalorder %s310_s21, 15 }
   0xc   : > { %p313_p7 = scmp.ge.s32.totalorder %s487_s19, 1  ;;  %p159_p9 = scmp.lt.s32.totalorder %s487_s19, 17 }
   0xd   : > { %s661_s23 = smov (%p30_p4, %s659_s23), 0  ;;  %p570_p8 = por %p124_p6, %p123_p5 }
   0xe   : > { %646 = sst [smem:[#allocation5_spill]] %s661_s23  ;;  %s102_s27 = ssub.s32 %s483_s18, %s661_s23 }
   0xf   : > { %s107_s28 = sadd.s32 1, %s467_s14  ;;  %s104_s29 = sor.u32 %s103_s24, %s102_s27 }
  0x10   : > { %p160_p10 = pnand %p313_p7, %p159_p9  ;;  %p105_p11 = scmp.eq.s32.totalorder %s104_s29, 0 }
  0x11   : > { %p186_p12 = scmp.lt.s32.totalorder (!%p160_p10), %s475_s16, 1  ;;  %p188_p13 = scmp.lt.s32.totalorder (!%p160_p10), %s471_s15, 7 }
  0x12   : > { %s579_s30 = scalar_select %p105_p11, %s467_s14, %s107_s28  }
  0x13   : > { %163 = sbr.rel (%p160_p10) target bundleno = 52 (0x34), region = 32  ;;  %s183_s4 = sand.u32 (!%p160_p10), 1, %s463_s13  }
  0x14   : > { %s314_s8 = sshll.u32 (!%p160_p10), %s183_s4, 2  ;;  %s320_s21 = sshll.u32 (!%p160_p10), %s475_s16, 3 }
  0x15   : > { %s216_s20 = scalar_lea.sflag (!%p160_p10), [#allocation3], %s183_s4 }
  0x18   : > { %s187_s5 = scalar_select %p186_p12, %s475_s16, 1  ;;  %v317_v0 = vld [vmem:[%s641_s1] ss:$0 sm:$0xff]  ;;  %vm213_vm0 = vcmask 257024  }
  0x19   : > { %s189_s6 = scalar_select %p188_p13, %s471_s15, 7  ;;  %v318_v2 = vld [vmem:[%s642_s2] ss:$0 sm:$0xff] }
  0x1a   : > { %s315_s7 = sshll.u32 %s187_s5, 3  ;;  %s227_s5 = sadd.s32 %s471_s15, %s320_s21 }
  0x1b   : > { %s191_s9 = sadd.s32 %s315_s7, %s189_s6  ;;  %s185_s6 = scalar_lea.vmem [#allocation2], %s314_s8 }
  0x1c   : > { %s316_s10 = sshll.u32 %s191_s9, 3  ;;  %s231_s7 = sshll.u32 %s185_s6, 4  ;;  %s232_s7 = int_to_ptr.vmem [resolvable:$true] %s231_s7 }
  0x1d   : > { %s193_s28 = scalar_lea.vmem %s640_s0, %s316_s10  ;;  %s321_s9 = sshll.u32 %s227_s5, 6 }
  0x1e   : > { %v194_v1 = vld [vmem:[%s193_s28] sm:$0xff]  ;;  %s229_s10 = scalar_lea.hbm %s643_s3, %s321_s9  ;;  %s395_s24 = scalar_lea.vmem %s232_s7, 64 }
  0x1f   : > { %v202_v3 = vmul.f32 %v317_v0, %v194_v1  ;;  %p396_p0 = scmp.ne.s32.totalorder %s232_s7, %s395_s24  ;;  %s489_s15 = smov [#allocation2]  }
  0x20   : > { %s399_s23 = sshll.u32 %s489_s15, 4  ;;  %s400_s23 = int_to_ptr.vmem [resolvable:$false] %s399_s23 }
  0x21   : > { %v210_v4 = vadd.f32 %v318_v2, %v202_v3  ;;  %p397_p1 = pnand %p396_p0, %p561_p3  ;;  %s401_s8 = scalar_lea.vmem %s400_s23, 128 }
  0x22   : > { %p402_p4 = scmp.lt.s32.totalorder %s232_s7, %s400_s23  ;;  %p403_p5 = scmp.lt.s32.totalorder %s401_s8, %s395_s24 }
  0x23   : > { %v211_v5 = vmax.f32 %v210_v4, 0.0  ;;  %p398_p2 = pneg %p397_p1 }
  0x24   : > { %p404_p6 = por %p403_p5, %p402_p4 }
  0x25   : > { %v212_v6 = vpack.c.bf16 %v211_v5, %v211_v5 }
  0x26   : > { %p405_p7 = pnand %p404_p6, %p398_p2 }
  0x27   : > { %214 = vst.msk [vmem:[%s185_s6] sm:$0xf] %vm213_vm0, %v212_v6 }
  0x28   : > { %408 = shalt.err (!%p405_p7)
}
  0x29   : > { %s409_s21 = scalar_lea.hbm %s229_s10, 64  ;;  %s413_s28 = scalar_lea.hbm %s643_s3, 1024 }
  0x2a   : > { %p410_p9 = scmp.ne.s32.totalorder %s229_s10, %s409_s21  ;;  %p414_p12 = scmp.lt.s32.totalorder %s229_s10, %s643_s3 }
  0x2b   : > { %p415_p13 = scmp.lt.s32.totalorder %s413_s28, %s409_s21 }
  0x2c   : > { %p411_p10 = pnand %p410_p9, %p561_p3 }
  0x2d   : > { %p416_p0 = por %p415_p13, %p414_p12 }
  0x2e   : > { %p412_p11 = pneg %p411_p10 }
  0x30   : > { %p417_p1 = pnand %p416_p0, %p412_p11 }
  0x32   : > { %420 = shalt.err (!%p417_p1)
}
  0x33   : > { %324 = dma.vmem_to_hbm [thread:$0]  (%p561_p3), %s232_s7, 64, %s229_s10, %s216_s20  }
  0x34 PF: > { %p330_p2 = scmp.ge.s32.totalorder %s487_s19, 2  ;;  %s243_s6 = sand.u32 1, %s459_s12  }
  0x35   : > { %s244_s9 = scalar_lea.sflag [#allocation3], %s243_s6 }
  0x36   : > { %p327_p4 = pnand %p330_p2, %p570_p8 }
  0x38   : > { %p328_p5 = pneg %p327_p4 }
  0x3a   : > { %454 = dma.done.wait (%p328_p5), %s244_s9, 64  }
  0x3b   : > { %456 = vsyncadd (%p328_p5), %s244_s9, 4294967232  ;;  %s16_s19 = sadd.s32 1, %s487_s19   ;;  %s648_s25 = sld [smem:[#allocation5_spill]] }
  0x3c   : > { %p13_p6 = scmp.ge.s32.totalorder %s16_s19, 18   ;;  %s649_s12 = smov %s463_s13 }
  0x3d   : > { %s650_s13 = smov %s467_s14  ;;  %s651_s14 = smov %s579_s30 }
  0x3e   : > { %s652_s15 = smov %s479_s17  ;;  %s653_s16 = smov %s483_s18 }
  0x3f   : > { %s654_s17 = smov %s657_s22  ;;  %15 = sbr.rel (!%p13_p6) target bundleno = 5 (0x5), region = 67 }
  0x41   : > { %s655_s18 = smov %s648_s25 }
  0x44   :  { %249 = vsyncpa [#allocation3], 1 }
  0x45   :  { %251 = vsyncpa [#allocation3 + $0x1], 1 }

</bundles_post_ra>
